<compile_context>
chip_gen: v7x
topology: tpu7x:2x2x1
jax: 0.10.0
libtpu: 0.0.40
codegen_flags: <defaults>
</compile_context>

<pallas_src>
import functools

import jax
import jax.numpy as jnp
from jax.experimental import pallas as pl
from jax.experimental.pallas import tpu as pltpu


def _rope_kernel(tab_ref, cos_ref, sin_ref, *, comp_rows, block_rows, mode, half):
    """One (block_rows, out_w) tile of the cos/sin tables.

    tab_ref: (2, W) f32 resident block; row 0 = per-lane frequency scale,
    row 1 = per-lane frequency offset, so that
        freqs[r, j] = (i*block_rows + r) * tab[0, j] + tab[1, j].

    mode:
      "full" : W == dim;   direct store.
      "fold" : W == 128;   dim < 128, several positions folded per lane-dense row.
      "half" : W == dim/2; lane-dense half, mirrored into both output halves.
      "pack2": W == dim == 128; two groups of block_rows/2 positions packed into
               lanes [0,64)/[64,128); mirrored rows rebuilt via roll + select.
    """
    i = pl.program_id(0)

    # (comp_rows, 1) sublane-only iota; lane broadcast happens in the multiply.
    pos = (jax.lax.broadcasted_iota(jnp.int32, (comp_rows, 1), 0)
           + i * block_rows).astype(jnp.float32)

    freqs = pos * tab_ref[0:1, :]                     # (comp_rows, W), f32
    if mode in ("fold", "pack2"):
        freqs = freqs + tab_ref[1:2, :]               # per-lane position offset

    c = jnp.cos(freqs)
    s = jnp.sin(freqs)

    if mode == "pack2":
        # lanes [0,64): positions i*B + [0, B/2); lanes [64,128): i*B + [B/2, B)
        lane = jax.lax.broadcasted_iota(jnp.int32, (comp_rows, 2 * half), 1)
        in_lo = lane < half

        def mirror(v):
            rolled = pltpu.roll(v, shift=half, axis=1)   # swap 64-lane halves (XLU)
            lo = jnp.where(in_lo, v, rolled)             # rows i*B + [0, B/2)
            hi = jnp.where(in_lo, rolled, v)             # rows i*B + [B/2, B)
            return lo, hi

        c_lo, c_hi = mirror(c)
        s_lo, s_hi = mirror(s)
        n = comp_rows
        cos_ref[0:n, :] = c_lo.astype(cos_ref.dtype)
        cos_ref[n:2 * n, :] = c_hi.astype(cos_ref.dtype)
        sin_ref[0:n, :] = s_lo.astype(sin_ref.dtype)
        sin_ref[n:2 * n, :] = s_hi.astype(sin_ref.dtype)
    elif mode == "half":
        cd = c.astype(cos_ref.dtype)
        sd = s.astype(sin_ref.dtype)
        cos_ref[:, 0:half] = cd
        cos_ref[:, half:2 * half] = cd
        sin_ref[:, 0:half] = sd
        sin_ref[:, half:2 * half] = sd
    else:  # "full" / "fold"
        cos_ref[...] = c.astype(cos_ref.dtype)
        sin_ref[...] = s.astype(sin_ref.dtype)


def rotary_embedding(x, seq_len, dim, base=10000):
    """Returns (cos, sin), each of shape (seq_len, dim), dtype == x.dtype."""
    assert dim % 2 == 0, f"hidden_dim must be divisible by 2, but got {dim}"
    out_dtype = jnp.dtype(x.dtype)
    itemsize = out_dtype.itemsize
    half = dim // 2

    # Sublane rows per packed vreg for the output dtype: 8 f32, 16 bf16, 32 int8.
    pack = 8 * max(1, 4 // itemsize)

    # ---- mode selection ---------------------------------------------------
    fold = 1
    if dim < 128 and 128 % dim == 0 and seq_len % (128 // dim) == 0:
        mode = "fold"                      # lane-dense output for small head dims
        fold = 128 // dim
    elif dim >= 256 and half % 128 == 0:
        mode = "half"                      # evaluate cos/sin on lane-dense half
    elif dim == 128 and seq_len >= 4 * pack:
        mode = "pack2"                     # pack two row-groups per vreg
    else:
        mode = "full"                      # fallback (masked stores if dim < 128)

    rows = seq_len // fold                 # logical output rows the grid tiles
    out_w = dim * fold                     # HBM output lane width
    comp_w = {"fold": 128, "pack2": dim, "half": half, "full": dim}[mode]

    # ---- tile sizing --------------------------------------------------------
    # No streamed inputs: only the ~0.35us/step overhead needs amortizing.
    # ~2 MiB per output per step, rows capped at 4096 and pack-aligned; keeps
    # 2 outputs x 2 buffers + f32 intermediates well under scoped VMEM defaults.
    align = pack * (2 if mode == "pack2" else 1)
    target_rows = min(4096, (2 << 20) // (out_w * itemsize))
    target_rows = max(align, (target_rows // align) * align)
    # Guarantee >= 2 grid steps whenever seq permits so v7x's 2 TCs both get work.
    half_rows = (((rows + 1) // 2) + align - 1) // align * align
    block_rows = min(target_rows, half_rows) if half_rows < rows else rows
    grid = (pl.cdiv(rows, block_rows),)

    comp_rows = block_rows // 2 if mode == "pack2" else block_rows

    # ---- per-lane scale/offset table (tiny resident (2, W) f32 block) ------
    inv_freq = 1.0 / (base ** (jnp.arange(0, dim, 2, dtype=jnp.float32) / dim))
    inv_full = jnp.concatenate([inv_freq, inv_freq], axis=0)      # (dim,)
    if mode == "fold":
        tiled = jnp.tile(inv_full, fold)                          # (128,)
        scale = fold * tiled
        offset = jnp.repeat(jnp.arange(fold, dtype=jnp.float32), dim) * tiled
    elif mode == "pack2":
        scale = inv_full
        lane = jnp.arange(dim)
        offset = jnp.where(lane >= half, float(comp_rows) * inv_full, 0.0)
    elif mode == "half":
        scale = inv_freq
        offset = jnp.zeros((half,), jnp.float32)
    else:
        scale = inv_full
        offset = jnp.zeros((dim,), jnp.float32)
    table = jnp.stack([scale, offset], axis=0).astype(jnp.float32)  # (2, comp_w)

    kernel = functools.partial(_rope_kernel, comp_rows=comp_rows,
                               block_rows=block_rows, mode=mode, half=half)

    cos, sin = pl.pallas_call(
        kernel,
        out_shape=(
            jax.ShapeDtypeStruct((rows, out_w), out_dtype),
            jax.ShapeDtypeStruct((rows, out_w), out_dtype),
        ),
        grid_spec=pltpu.PrefetchScalarGridSpec(
            num_scalar_prefetch=0,
            grid=grid,
            # Frequency table is resident (same block every step).
            in_specs=[pl.BlockSpec((2, comp_w), lambda i: (0, 0))],
            out_specs=[
                pl.BlockSpec((block_rows, out_w), lambda i: (i, 0)),
                pl.BlockSpec((block_rows, out_w), lambda i: (i, 0)),
            ],
        ),
        compiler_params=pltpu.CompilerParams(
            # Independent seq tiles: lets v7x shard them across its 2 TensorCores.
            dimension_semantics=("parallel",),
        ),
    )(table)

    if fold > 1:
        cos = cos.reshape(seq_len, dim)   # free row-major view back to (seq, dim)
        sin = sin.reshape(seq_len, dim)
    return cos, sin


if __name__ == "__main__":
    key = jax.random.PRNGKey(0)

    def reference(seq_len, dim, base, dtype):
        inv_freq = 1.0 / (base ** (jnp.arange(0, dim, 2, dtype=jnp.float32) / dim))
        t = jnp.arange(seq_len, dtype=jnp.float32)
        freqs = jnp.outer(t, inv_freq)
        emb = jnp.concatenate([freqs, freqs], axis=-1)
        return jnp.cos(emb).astype(dtype), jnp.sin(emb).astype(dtype)

    cases = [
        # (batch, heads, seq, dim, dtype, atol)
        (2, 4, 16, 32, jnp.float32, 1e-4),      # fold mode (dim < 128, lane-dense)
        (1, 2, 777, 128, jnp.bfloat16, 2e-2),   # pack2 mode, ragged last block, bf16
        (1, 2, 640, 128, jnp.float32, 5e-4),    # pack2 mode, f32
        (1, 2, 640, 256, jnp.float32, 5e-4),    # half-dedupe mode
        (1, 1, 40, 96, jnp.float32, 1e-4),      # full-mode fallback (dim !| 128)
    ]
    for (b, h, s, d, dtype, atol) in cases:
        x = jax.random.normal(key, (b, h, s, d), dtype=jnp.float32).astype(dtype)
        cos, sin = rotary_embedding(x, seq_len=s, dim=d, base=10000)
        cos, sin = jax.block_until_ready((cos, sin))

        ref_cos, ref_sin = reference(s, d, 10000, dtype)
        assert cos.shape == (s, d) and sin.shape == (s, d)
        assert cos.dtype == jnp.dtype(dtype) and sin.dtype == jnp.dtype(dtype)
        assert jnp.allclose(cos.astype(jnp.float32), ref_cos.astype(jnp.float32),
                            atol=atol), f"cos mismatch at seq={s}, dim={d}"
        assert jnp.allclose(sin.astype(jnp.float32), ref_sin.astype(jnp.float32),
                            atol=atol), f"sin mismatch at seq={s}, dim={d}"

    print("KERNEL_OK")
</pallas_src>

<mosaic_0001>
module attributes {stable_mosaic.version = 11 : i64} {
  func.func @_rope_kernel(%arg0: i32, %arg1: memref<2x128xf32, #tpu.memory_space<vmem>>, %arg2: memref<4x128xf32, #tpu.memory_space<vmem>>, %arg3: memref<4x128xf32, #tpu.memory_space<vmem>>) attributes {dimension_semantics = [#tpu.dimension_semantics<parallel>], iteration_bounds = array<i64: 1>, scalar_prefetch = 0 : i64, scratch_operands = 0 : i64, tpu.core_type = #tpu.core_type<tc>, window_params = [{pipeline_mode = #tpu.pipeline_mode<synchronous>, transform_indices = @transform_0, window_bounds = array<i64: 2, 128>}, {transform_indices = @transform_1, window_bounds = array<i64: 4, 128>}, {transform_indices = @transform_2, window_bounds = array<i64: 4, 128>}]} {
    %0 = tpu.iota {dimensions = array<i32: 0>} : vector<4x1xi32>
    %c4_i32 = arith.constant 4 : i32
    %1 = arith.muli %arg0, %c4_i32 : i32
    %2 = vector.broadcast %1 : i32 to vector<4x1xi32>
    %3 = arith.addi %0, %2 : vector<4x1xi32>
    %4 = arith.sitofp %3 : vector<4x1xi32> to vector<4x1xf32>
    %c0 = arith.constant 0 : index
    %c0_0 = arith.constant 0 : index
    %5 = vector.load %arg1[%c0, %c0_0] : memref<2x128xf32, #tpu.memory_space<vmem>>, vector<1x128xf32>
    %6 = vector.broadcast %4 : vector<4x1xf32> to vector<4x128xf32>
    %7 = vector.broadcast %5 : vector<1x128xf32> to vector<4x128xf32>
    %8 = arith.mulf %6, %7 : vector<4x128xf32>
    %c1 = arith.constant 1 : index
    %c0_1 = arith.constant 0 : index
    %9 = vector.load %arg1[%c1, %c0_1] : memref<2x128xf32, #tpu.memory_space<vmem>>, vector<1x128xf32>
    %10 = vector.broadcast %9 : vector<1x128xf32> to vector<4x128xf32>
    %11 = arith.addf %8, %10 : vector<4x128xf32>
    %12 = math.cos %11 : vector<4x128xf32>
    %13 = math.sin %11 : vector<4x128xf32>
    %c0_2 = arith.constant 0 : index
    %c0_3 = arith.constant 0 : index
    %14 = vector.load %arg2[%c0_2, %c0_3] : memref<4x128xf32, #tpu.memory_space<vmem>>, vector<4x128xf32>
    tpu.vector_store %arg2[%c0_2, %c0_3], %12 {strides = array<i32>} : memref<4x128xf32, #tpu.memory_space<vmem>>, vector<4x128xf32>,
    %c0_4 = arith.constant 0 : index
    %c0_5 = arith.constant 0 : index
    %15 = vector.load %arg3[%c0_4, %c0_5] : memref<4x128xf32, #tpu.memory_space<vmem>>, vector<4x128xf32>
    tpu.vector_store %arg3[%c0_4, %c0_5], %13 {strides = array<i32>} : memref<4x128xf32, #tpu.memory_space<vmem>>, vector<4x128xf32>,
    return
  }
  func.func @transform_0(%arg0: i32) -> (i32, i32) {
    %c0_i32 = arith.constant 0 : i32
    %c0_i32_0 = arith.constant 0 : i32
    %c0_i32_1 = arith.constant 0 : i32
    return %c0_i32, %c0_i32_0 : i32, i32
  }
  func.func @transform_1(%arg0: i32) -> (i32, i32) {
    %c0_i32 = arith.constant 0 : i32
    %c0_i32_0 = arith.constant 0 : i32
    return %arg0, %c0_i32 : i32, i32
  }
  func.func @transform_2(%arg0: i32) -> (i32, i32) {
    %c0_i32 = arith.constant 0 : i32
    %c0_i32_0 = arith.constant 0 : i32
    return %arg0, %c0_i32 : i32, i32
  }
}

</mosaic_0001>

<bundles_post_ra>
// kernel: tpu_custom_call.1
= control target key start
LH: loop header
LB: loop body
LE: loop exit
PB: predicated region body
PF: predicated region fallthrough
CT: control target
= control target key end

     0   :  { %8 = vsyncpa [#allocation3], 0  ;;  %s460_s0 = inlined_call_operand.hbm [shape: f32[2,128], index: 0, kind: input, shape index: {}]   ;;  %s461_s1 = inlined_call_operand.hbm [shape: f32[4,128], index: 1, kind: output, shape index: {0}]   ;;  %s462_s2 = inlined_call_operand.hbm [shape: f32[4,128], index: 2, kind: output, shape index: {1}]  }
   0x1   :  { %9 = vsyncpa [#allocation4], 0 }
   0x2   :  { %10 = vsyncpa [#allocation7], 0  ;;  %s379_s9 = smov [#allocation2]   ;;  %s307_s13 = scalar_lea.hbm %s460_s0, 32 }
   0x3   :  { %s17_s10 = sshll.u32 %s379_s9, 4  ;;  %p308_p0 = scmp.ne.s32.totalorder %s460_s0, %s307_s13  ;;  %s18_s10 = int_to_ptr.vmem [resolvable:$true] %s17_s10 }
   0x4   :  { %p311_p1 = scmp.lt.u32.totalorder %s307_s13, %s460_s0 }
   0x6   :  { %p313_p2 = pnand %p311_p1, %p308_p0 }
   0x8   :  { %316 = shalt.err (!%p313_p2)
}
   0x9   :  { %s317_s18 = scalar_lea.vmem %s18_s10, 32  ;;  %p322_p4 = scmp.lt.s32.totalorder %s18_s10, %s18_s10 }
   0xa   :  { %p318_p3 = scmp.ne.s32.totalorder %s18_s10, %s317_s18  ;;  %p323_p5 = scmp.lt.s32.totalorder %s317_s18, %s317_s18 }
   0xc   :  { %p324_p6 = por %p323_p5, %p322_p4 }
   0xe   :  { %p325_p7 = pnand %p324_p6, %p318_p3 }
  0x10   :  { %328 = shalt.err (!%p325_p7)
}
  0x11   :  { %20 = dma.hbm_to_vmem [thread:$0]  %s460_s0, 32, %s18_s10, [#allocation3]  }
  0x12   :  { %373 = dma.done.wait [#allocation3], 32  }
  0x13   :  { %374 = vsyncadd [#allocation3], 4294967264  ;;  %v24_v0 = vlaneseq  ;;  %v280_v3 = vld [vmem:[#allocation2] ss:$0 sm:$0xff]  ;;  %v281_v4 = vld [vmem:[#allocation2 + $0x1] ss:$0 sm:$0xff] }
  0x14   :  { %v380_v18 = vmov 683565275   ;;  %v381_v20 = vmov 2475754826   ;;  %v382_v22 = vmov 2131351028  }
  0x15   :  { %v25_v1 = vshrl.u32 %v24_v0, 7  ;;  %v383_v24 = vmov 2102212464   ;;  %v384_v26 = vmov 920167782   ;;  %s386_s0 = smov [#allocation5]  }
  0x16   :  { %v385_v33 = vmov 1326507024   ;;  %s257_s21 = sshll.u32 %s386_s0, 4  ;;  %s387_s22 = smov [#allocation6]   ;;  %s258_s21 = int_to_ptr.vmem [resolvable:$true] %s257_s21 }
  0x17   :  { %v29_v2 = vcvt.s32.f32 %v25_v1  ;;  %s267_s23 = sshll.u32 %s387_s22, 4  ;;  %s329_s24 = scalar_lea.vmem %s258_s21, 64  ;;  %s268_s23 = int_to_ptr.vmem [resolvable:$true] %s267_s23 }
  0x18   :  { %p330_p8 = scmp.ne.s32.totalorder %s258_s21, %s329_s24  ;;  %p334_p9 = scmp.lt.s32.totalorder %s258_s21, %s258_s21 }
  0x19   :  { %v35_v5 = vmul.f32 %v280_v3, %v29_v2  ;;  %p335_p10 = scmp.lt.s32.totalorder %s329_s24, %s329_s24 }
  0x1b   :  { %v415_v6 = vadd.f32 %v281_v4, %v35_v5  ;;  %p336_p11 = por %p335_p10, %p334_p9 }
  0x1d   :  { %v45_v7 = vand.u32 2139095040, %v415_v6  ;;  %v42_v9 = vand.u32 2147483647, %v415_v6  ;;  %vm44_vm7 = vcmp.lt.s32.totalorder %v415_v6, 0  ;;  %vm134_vm15 = vweird.f32 %v415_v6  ;;  %p337_p12 = pnand %p336_p11, %p330_p8 }
  0x1f   :  { %v46_v8 = vshrl.u32 %v45_v7, 23  ;;  %v49_v12 = vand.u32 8388607, %v42_v9  ;;  %vm43_vm8 = vcmp.le.f32.partialorder %v42_v9, 0.7853982 }
  0x21   :  { %v282_v10 = vadd.s32 4294967169, %v46_v8  ;;  %v50_v15 = vor.u32 8388608, %v49_v12 }
  0x23   :  { %v52_v11 = vadd.s32 1, %v282_v10  ;;  %v90_v35 = vshll.u32 %v50_v15, 8 }
  0x25   :  { %vm53_vm0 = vcmp.gt.s32.totalorder %v52_v11, 0 }
  0x26   :  { %v54_v13 = vsel %vm53_vm0, %v52_v11, 0 }
  0x27   :  { %v56_v14 = vand.u32 31, %v54_v13  ;;  %v55_v16 = vshrl.u32 %v54_v13, 5 }
  0x29   :  { %v57_v17 = vsub.s32 32, %v56_v14  ;;  %v59_v19 = vshll.u32 %v380_v18, %v56_v14  ;;  %v62_v21 = vshll.u32 %v381_v20, %v56_v14  ;;  %v65_v23 = vshll.u32 %v382_v22, %v56_v14 }
  0x2a   :  { %v68_v25 = vshll.u32 %v383_v24, %v56_v14  ;;  %v71_v27 = vshll.u32 %v384_v26, %v56_v14  ;;  %vm74_vm1 = vcmp.lt.s32.totalorder %v55_v16, 1  ;;  %vm77_vm2 = vcmp.lt.s32.totalorder %v55_v16, 4 }
  0x2b   :  { %v58_v28 = vshrl.u32 %v380_v18, %v57_v17  ;;  %v60_v29 = vshrl.u32 %v381_v20, %v57_v17  ;;  %v63_v30 = vshrl.u32 %v382_v22, %v57_v17  ;;  %v66_v31 = vshrl.u32 %v383_v24, %v57_v17 }
  0x2c   :  { %v69_v32 = vshrl.u32 %v384_v26, %v57_v17  ;;  %v72_v34 = vshrl.u32 %v385_v33, %v57_v17  ;;  %vm75_vm3 = vcmp.lt.s32.totalorder %v55_v16, 2  ;;  %vm76_vm4 = vcmp.lt.s32.totalorder %v55_v16, 3 }
  0x2d   :  { %v61_v36 = vor.u32 %v60_v29, %v59_v19  ;;  %v64_v37 = vor.u32 %v63_v30, %v62_v21  ;;  %v67_v38 = vor.u32 %v66_v31, %v65_v23 }
  0x2e   :  { %v70_v39 = vor.u32 %v69_v32, %v68_v25  ;;  %v73_v40 = vor.u32 %v72_v34, %v71_v27 }
  0x2f   :  { %v78_v41 = vsel %vm74_vm1, %v58_v28, %v61_v36  ;;  %v79_v42 = vsel %vm77_vm2, %v67_v38, 2102212464  ;;  %v82_v43 = vsel %vm74_vm1, %v61_v36, %v64_v37  ;;  %v86_v44 = vsel %vm74_vm1, %v64_v37, %v67_v38 }
  0x30   :  { %v80_v45 = vsel %vm76_vm4, %v64_v37, %v79_v42  ;;  %v83_v46 = vsel %vm77_vm2, %v70_v39, 920167782  ;;  %v87_v47 = vsel %vm77_vm2, %v73_v40, 1326507024 }
  0x31   :  { %v84_v48 = vsel %vm76_vm4, %v67_v38, %v83_v46  ;;  %v88_v49 = vsel %vm76_vm4, %v70_v39, %v87_v47  ;;  %v81_v50 = vsel %vm75_vm3, %v78_v41, %v80_v45 }
  0x32   :  { %v85_v51 = vsel %vm75_vm3, %v82_v43, %v84_v48  ;;  %v89_v52 = vsel %vm75_vm3, %v86_v44, %v88_v49  ;;  %v97_v57 = vmul.u32 %v90_v35, %v81_v50 }
  0x33   :  { %v421_v53 = vmul.u32.u64.low %v90_v35, %v89_v52  ;;  %v422_v54 = vmul.u32.u64.high %v90_v35, %v89_v52, %v421_v53  ;;  %v424_v55 = vmul.u32.u64.low %v90_v35, %v85_v51  ;;  %v425_v56 = vmul.u32.u64.high %v90_v35, %v85_v51, %v424_v55 }
  0x35   :  { %vm99_vm5 = vc.u32 %v422_v54, %v424_v55  ;;  %v100_v58 = vadd.s32 1, %v425_v56  ;;  %v98_v5 = vadd.s32 %v424_v55, %v422_v54 }
  0x37   :  { %v101_v59 = vsel %vm99_vm5, %v100_v58, %v425_v56 }
  0x38   :  { %v102_v60 = vadd.s32 %v101_v59, %v97_v57 }
  0x3a   :  { %v103_v61 = vadd.s32 536870912, %v102_v60 }
  0x3c   :  { %v104_v62 = vshrl.u32 %v103_v61, 30 }
  0x3e   :  { %v105_v63 = vshll.u32 %v104_v62, 30  ;;  %v128_v19 = vsub.s32 4, %v104_v62 }
  0x40   :  { %v106_v0 = vsub.s32 %v102_v60, %v105_v63  ;;  %v129_v22 = vsel %vm44_vm7, %v128_v19, %v104_v62 }
  0x41   :  { %v131_v25 = vsel %vm43_vm8, 0, %v129_v22 }
  0x42   :  { %v108_v1 = vsub.s32 0, %v106_v0  ;;  %v238_v26 = vadd.s32 3, %v131_v25  ;;  %v135_v27 = vand.u32 3, %v131_v25 }
  0x44   :  { %v283_v2 = vmin.u32 %v108_v1, %v106_v0  ;;  %v239_v28 = vand.u32 3, %v238_v26  ;;  %vm140_vm9 = vcmp.eq.s32.totalorder %v135_v27, 2  ;;  %vm137_vm11 = vcmp.eq.s32.totalorder %v135_v27, 0 }
  0x45   :  { %vm136_vm13 = vcmp.lt.s32.totalorder %v135_v27, 2 }
  0x46   :  { %v110_v3 = vclz %v283_v2  ;;  %vm244_vm10 = vcmp.eq.s32.totalorder %v239_v28, 2  ;;  %vm241_vm12 = vcmp.eq.s32.totalorder %v239_v28, 0  ;;  %vm240_vm14 = vcmp.lt.s32.totalorder %v239_v28, 2 }
  0x48   :  { %v284_v4 = vadd.s32 4294967294, %v110_v3 }
  0x4a   :  { %vm285_vm6 = vcmp.lt.s32.totalorder %v284_v4, 0 }
  0x4b   :  { %v113_v7 = vsel %vm285_vm6, 0, %v284_v4 }
  0x4c   :  { %v114_v8 = vsub.s32 32, %v113_v7  ;;  %v115_v10 = vshll.u32 %v106_v0, %v113_v7  ;;  %v118_v11 = vsub.s32 4294967266, %v113_v7 }
  0x4e   :  { %v116_v12 = vshrl.u32 %v98_v5, %v114_v8  ;;  %v119_v13 = vadd.s32 127, %v118_v11 }
  0x50   :  { %v117_v14 = vor.u32 %v116_v12, %v115_v10  ;;  %v120_v15 = vshll.u32 %v119_v13, 23 }
  0x52   :  { %v121_v16 = vor.u32 4788187, %v120_v15  ;;  %v124_v17 = vcvt.s32.f32 %v117_v14 }
  0x54   :  { %v122_v18 = vand.u32 2147483647, %v121_v16 }
  0x56   :  { %v125_v20 = vmul.f32 %v124_v17, %v122_v18 }
  0x58   :  { %v126_v21 = vxor.u32 2147483648, %v125_v20 }
  0x5a   :  { %v127_v23 = vsel %vm44_vm7, %v126_v21, %v125_v20 }
  0x5b   :  { %v130_v24 = vsel %vm43_vm8, %v415_v6, %v127_v23 }
  0x5c   :  { %303 = vcosq.f32 %v130_v24 }
  0x5d   :  { %305 = vsinq.f32 %v130_v24 }
  0x66   :  { %v304_v29 = vpop.eup %303 }
  0x67   :  { %v306_v30 = vpop.eup %305  ;;  %v141_v31 = vxor.u32 2147483648, %v304_v29 }
  0x68   :  { %v138_v9 = vxor.u32 2147483648, %v306_v30 }
  0x69   :  { %v142_v32 = vsel %vm140_vm9, %v141_v31, %v306_v30  ;;  %v246_v33 = vsel %vm244_vm10, %v141_v31, %v306_v30 }
  0x6a   :  { %v139_v34 = vsel %vm137_vm11, %v304_v29, %v138_v9  ;;  %v243_v35 = vsel %vm241_vm12, %v304_v29, %v138_v9 }
  0x6b   :  { %v143_v36 = vsel %vm136_vm13, %v139_v34, %v142_v32  ;;  %v247_v37 = vsel %vm240_vm14, %v243_v35, %v246_v33 }
  0x6c   :  { %v144_v38 = vsel %vm134_vm15, nan, %v143_v36  ;;  %v248_v39 = vsel %vm134_vm15, nan, %v247_v37 }
  0x6d   :  { %249 = vst [vmem:[#allocation5] sm:$0xf] %v144_v38  ;;  %250 = vst [vmem:[#allocation6] sm:$0xf] %v248_v39 }
  0x6e   :  { %340 = shalt.err (!%p337_p12)
}
  0x6f   :  { %s341_s27 = scalar_lea.hbm %s461_s1, 64 }
  0x70   :  { %p342_p13 = scmp.ne.s32.totalorder %s461_s1, %s341_s27  ;;  %p345_p0 = scmp.lt.u32.totalorder %s341_s27, %s461_s1 }
  0x72   :  { %p347_p1 = pnand %p345_p0, %p342_p13 }
  0x74   :  { %350 = shalt.err (!%p347_p1)
}
  0x75   :  { %260 = dma.vmem_to_hbm [thread:$0]  %s258_s21, 64, %s461_s1, [#allocation4]  }
  0x76   :  { %s351_s6 = scalar_lea.vmem %s268_s23, 64  ;;  %p356_p3 = scmp.lt.s32.totalorder %s268_s23, %s268_s23 }
  0x77   :  { %p352_p2 = scmp.ne.s32.totalorder %s268_s23, %s351_s6  ;;  %p357_p4 = scmp.lt.s32.totalorder %s351_s6, %s351_s6 }
  0x79   :  { %p358_p5 = por %p357_p4, %p356_p3 }
  0x7b   :  { %p359_p6 = pnand %p358_p5, %p352_p2 }
  0x7d   :  { %362 = shalt.err (!%p359_p6)
}
  0x7e   :  { %s363_s9 = scalar_lea.hbm %s462_s2, 64 }
  0x7f   :  { %p364_p7 = scmp.ne.s32.totalorder %s462_s2, %s363_s9  ;;  %p367_p8 = scmp.lt.u32.totalorder %s363_s9, %s462_s2 }
  0x81   :  { %p369_p9 = pnand %p367_p8, %p364_p7 }
  0x83   :  { %372 = shalt.err (!%p369_p9)
}
  0x84   :  { %270 = dma.vmem_to_hbm [thread:$0]  %s268_s23, 64, %s462_s2, [#allocation7]  }
  0x85   :  { %375 = dma.done.wait [#allocation4], 64  }
  0x86   :  { %376 = vsyncadd [#allocation4], 4294967232 }
  0x87   :  { %377 = dma.done.wait [#allocation7], 64  }
  0x88   :  { %378 = vsyncadd [#allocation7], 4294967232 }
  0x89   :  { %277 = vsyncpa [#allocation3], 1 }
  0x8a   :  { %278 = vsyncpa [#allocation4], 1 }
  0x8b   :  { %279 = vsyncpa [#allocation7], 1 }

</bundles_post_ra>
